<compile_context>
chip_gen: v7x
topology: tpu7x:2x2x1
jax: 0.10.0
libtpu: 0.0.40
codegen_flags: <defaults>
</compile_context>

<pallas_src>
import functools

import jax
import jax.numpy as jnp
from jax.experimental import pallas as pl
from jax.experimental.pallas import tpu as pltpu

L = 3      # number of conditioned blocks in the sequential container
N = 16     # batch(2) * seq(8) rows
D = 32     # hidden / mapping width

_LANE = 128     # TPU lane width (last dim should be a multiple of this)
_BF16_SUB = 16  # bf16 sublane tile (second-to-last dim multiple)


def _round_up(v, m):
    return -(-v // m) * m


def _pick_row_tile(n):
    """Largest row tile <=256 (multiple of 16) with acceptable pad waste."""
    n16 = _round_up(n, _BF16_SUB)
    if n16 <= 256:
        return n16
    for tn in (256, 128, 64, 32):
        pad = _round_up(n, tn) - n
        if pad * 4 <= n:          # <= 25% padded-row waste
            return tn
    return _BF16_SUB


def _kernel(x_ref, map_ref, w_ref, mw_ref, b_ref, o_ref, *, num_blocks, dp):
    """One row-block: runs all `num_blocks` conditioned blocks in VMEM.

    x_ref:   (TN, Dp)        bf16 activations (row block)
    map_ref: (TN, Dp)        bf16 conditioning tensor (row block)
    w_ref:   (L, Dp, Dp)     bf16 per-block x-weights, stored (in, out)
    mw_ref:  (Dp, L*Dp)      bf16 stacked mapping weights [M0 | M1 | ...]
    b_ref:   (1, L*Dp)       f32 stacked biases [b0 | b1 | ...]
    o_ref:   (TN, Dp)        f32 output of the last block
    """
    # Loop-invariant mapping projection, hoisted: ONE (TN,Dp)x(Dp,L*Dp) matmul
    # with the stacked biases folded in by a single broadcast add.
    m_proj = (
        jnp.dot(map_ref[...], mw_ref[...], preferred_element_type=jnp.float32)
        + b_ref[...]
    )  # (TN, L*Dp) f32

    act_bf16 = x_ref[...]                      # bf16 MXU operand
    act_f32 = act_bf16.astype(jnp.float32)     # only used if num_blocks == 0

    # Static unrolled loop over the module list (L is small & fixed).
    for l in range(num_blocks):
        h = (
            jnp.dot(act_bf16, w_ref[l], preferred_element_type=jnp.float32)
            + m_proj[:, l * dp:(l + 1) * dp]
        )
        # SiLU in f32: sigmoid(h) = 0.5*(1 + tanh(0.5*h)) -> one EUP op.
        act_f32 = h * (0.5 * jnp.tanh(0.5 * h) + 0.5)
        act_bf16 = act_f32.astype(jnp.bfloat16)

    o_ref[...] = act_f32.astype(o_ref.dtype)


def pack_params(weights, map_weights, biases):
    """One-time parameter packing (pad to lane-dense, stack, cast to bf16).

    weights:      (L, D, D) per-block x-weights, stored (in, out)
    map_weights:  (L, D, D) per-block mapping-weights, stored (in, out)
    biases:       (L, 1, D)
    """
    num_blocks, d, _ = weights.shape
    dp = _round_up(d, _LANE)
    pad_c = dp - d

    w_p = jnp.pad(weights.astype(jnp.float32),
                  ((0, 0), (0, pad_c), (0, pad_c))).astype(jnp.bfloat16)

    mw_p = jnp.pad(map_weights.astype(jnp.float32),
                   ((0, 0), (0, pad_c), (0, pad_c)))
    # Stack mapping weights column-wise: column block l == map_weights[l].
    mw_stack = jnp.transpose(mw_p, (1, 0, 2)).reshape(dp, num_blocks * dp)
    mw_stack = mw_stack.astype(jnp.bfloat16)

    b_stack = jnp.pad(biases.astype(jnp.float32),
                      ((0, 0), (0, 0), (0, pad_c))).reshape(1, num_blocks * dp)

    return w_p, mw_stack, b_stack


def conditioned_sequential(x, mapping, packed):
    """Per-call wrapper: pads activations only, then launches the kernel.

    x, mapping: (N, D) f32
    packed:     output of pack_params()
    """
    w_p, mw_stack, b_stack = packed
    n, d = x.shape
    num_blocks, dp = w_p.shape[0], w_p.shape[1]

    tn = _pick_row_tile(n)
    np_ = _round_up(n, tn)
    grid = (np_ // tn,)
    pad_r, pad_c = np_ - n, dp - d

    # Activations stream in bf16 (MXU operand dtype); output stays f32.
    x_p = jnp.pad(x.astype(jnp.float32), ((0, pad_r), (0, pad_c))).astype(jnp.bfloat16)
    m_p = jnp.pad(mapping.astype(jnp.float32), ((0, pad_r), (0, pad_c))).astype(jnp.bfloat16)

    # Only worth cross-core sharding when each step carries real work.
    semantics = ("parallel",) if (grid[0] > 1 and tn >= 128) else ("arbitrary",)

    out = pl.pallas_call(
        functools.partial(_kernel, num_blocks=num_blocks, dp=dp),
        out_shape=jax.ShapeDtypeStruct((np_, dp), jnp.float32),
        grid_spec=pltpu.PrefetchScalarGridSpec(
            num_scalar_prefetch=0,
            grid=grid,
            in_specs=[
                pl.BlockSpec((tn, dp), lambda i: (i, 0)),                  # x rows
                pl.BlockSpec((tn, dp), lambda i: (i, 0)),                  # mapping rows
                pl.BlockSpec((num_blocks, dp, dp), lambda i: (0, 0, 0)),   # W (resident)
                pl.BlockSpec((dp, num_blocks * dp), lambda i: (0, 0)),     # M stacked (resident)
                pl.BlockSpec((1, num_blocks * dp), lambda i: (0, 0)),      # biases stacked (resident)
            ],
            out_specs=pl.BlockSpec((tn, dp), lambda i: (i, 0)),
        ),
        compiler_params=pltpu.CompilerParams(
            dimension_semantics=semantics,
        ),
    )(x_p, m_p, w_p, mw_stack, b_stack)

    return out[:n, :d].astype(x.dtype)


def reference(x, mapping, weights, map_weights, biases):
    """Pure-JAX f32 reference replicating the PyTorch semantics."""
    h = x.astype(jnp.float32)
    m = mapping.astype(jnp.float32)
    for l in range(weights.shape[0]):
        z = h @ weights[l] + m @ map_weights[l] + biases[l]
        h = z * jax.nn.sigmoid(z)
    return h.astype(x.dtype)


if __name__ == "__main__":
    key = jax.random.PRNGKey(0)
    kx, km, kw, kmw, kb = jax.random.split(key, 5)

    x = jax.random.normal(kx, (N, D), dtype=jnp.float32)
    mapping = jax.random.normal(km, (N, D), dtype=jnp.float32)
    weights = jax.random.normal(kw, (L, D, D), dtype=jnp.float32) * 0.1
    map_weights = jax.random.normal(kmw, (L, D, D), dtype=jnp.float32) * 0.1
    biases = jax.random.normal(kb, (L, 1, D), dtype=jnp.float32) * 0.01

    # One-time parameter packing (kept out of the per-call path).
    packed = jax.block_until_ready(pack_params(weights, map_weights, biases))

    out = conditioned_sequential(x, mapping, packed)
    out = jax.block_until_ready(out)

    ref = reference(x, mapping, weights, map_weights, biases)
    assert out.shape == (N, D)
    # Tolerance loosened vs. the pure-f32 reference because the matmuls run
    # with bf16 operands (f32 accumulation) and the activation is re-cast to
    # bf16 between blocks.
    assert jnp.allclose(out, ref, atol=3e-2, rtol=3e-2), "mismatch vs reference"

    print("KERNEL_OK")
</pallas_src>

<mosaic_0001>
module attributes {stable_mosaic.version = 11 : i64} {
  func.func @_kernel(%arg0: i32, %arg1: memref<16x128xbf16, #tpu.memory_space<vmem>>, %arg2: memref<16x128xbf16, #tpu.memory_space<vmem>>, %arg3: memref<3x128x128xbf16, #tpu.memory_space<vmem>>, %arg4: memref<128x384xbf16, #tpu.memory_space<vmem>>, %arg5: memref<1x384xf32, #tpu.memory_space<vmem>>, %arg6: memref<16x128xf32, #tpu.memory_space<vmem>>) attributes {dimension_semantics = [#tpu.dimension_semantics<arbitrary>], iteration_bounds = array<i64: 1>, scalar_prefetch = 0 : i64, scratch_operands = 0 : i64, tpu.core_type = #tpu.core_type<tc>, window_params = [{transform_indices = @transform_0, window_bounds = array<i64: 16, 128>}, {transform_indices = @transform_1, window_bounds = array<i64: 16, 128>}, {pipeline_mode = #tpu.pipeline_mode<synchronous>, transform_indices = @transform_2, window_bounds = array<i64: 3, 128, 128>}, {pipeline_mode = #tpu.pipeline_mode<synchronous>, transform_indices = @transform_3, window_bounds = array<i64: 128, 384>}, {pipeline_mode = #tpu.pipeline_mode<synchronous>, transform_indices = @transform_4, window_bounds = array<i64: 1, 384>}, {transform_indices = @transform_5, window_bounds = array<i64: 16, 128>}]} {
    %c0 = arith.constant 0 : index
    %c0_0 = arith.constant 0 : index
    %0 = vector.load %arg2[%c0, %c0_0] : memref<16x128xbf16, #tpu.memory_space<vmem>>, vector<16x128xbf16>
    %c0_1 = arith.constant 0 : index
    %c0_2 = arith.constant 0 : index
    %1 = vector.load %arg4[%c0_1, %c0_2] : memref<128x384xbf16, #tpu.memory_space<vmem>>, vector<128x384xbf16>
    %cst = arith.constant dense<0.000000e+00> : vector<16x384xf32>
    %2 = tpu.matmul %0, %1, %cst {dimension_numbers = #tpu.dot_dimension_numbers<[1], [0], [0], [1], [0, 0, 1, 1], [], []>} : vector<16x128xbf16>, vector<128x384xbf16>, vector<16x384xf32> -> vector<16x384xf32>
    %c0_3 = arith.constant 0 : index
    %c0_4 = arith.constant 0 : index
    %3 = vector.load %arg5[%c0_3, %c0_4] : memref<1x384xf32, #tpu.memory_space<vmem>>, vector<1x384xf32>
    %4 = vector.broadcast %3 : vector<1x384xf32> to vector<16x384xf32>
    %5 = arith.addf %2, %4 : vector<16x384xf32>
    %c0_5 = arith.constant 0 : index
    %c0_6 = arith.constant 0 : index
    %6 = vector.load %arg1[%c0_5, %c0_6] : memref<16x128xbf16, #tpu.memory_space<vmem>>, vector<16x128xbf16>
    %c0_7 = arith.constant 0 : index
    %c0_8 = arith.constant 0 : index
    %c0_9 = arith.constant 0 : index
    %7 = vector.load %arg3[%c0_7, %c0_8, %c0_9] : memref<3x128x128xbf16, #tpu.memory_space<vmem>>, vector<1x128x128xbf16>
    %8 = vector.shape_cast %7 : vector<1x128x128xbf16> to vector<128x128xbf16>
    %cst_10 = arith.constant dense<0.000000e+00> : vector<16x128xf32>
    %9 = tpu.matmul %6, %8, %cst_10 {dimension_numbers = #tpu.dot_dimension_numbers<[1], [0], [0], [1], [0, 0, 1, 1], [], []>} : vector<16x128xbf16>, vector<128x128xbf16>, vector<16x128xf32> -> vector<16x128xf32>
    %10 = vector.extract_strided_slice %5 {offsets = [0, 0], sizes = [16, 128], strides = [1, 1]} : vector<16x384xf32> to vector<16x128xf32>
    %11 = arith.addf %9, %10 : vector<16x128xf32>
    %cst_11 = arith.constant 5.000000e-01 : f32
    %12 = vector.broadcast %cst_11 : f32 to vector<16x128xf32>
    %13 = arith.mulf %12, %11 : vector<16x128xf32>
    %14 = math.tanh %13 : vector<16x128xf32>
    %cst_12 = arith.constant 5.000000e-01 : f32
    %15 = vector.broadcast %cst_12 : f32 to vector<16x128xf32>
    %16 = arith.mulf %15, %14 : vector<16x128xf32>
    %cst_13 = arith.constant 5.000000e-01 : f32
    %17 = vector.broadcast %cst_13 : f32 to vector<16x128xf32>
    %18 = arith.addf %16, %17 : vector<16x128xf32>
    %19 = arith.mulf %11, %18 : vector<16x128xf32>
    %20 = arith.truncf %19 : vector<16x128xf32> to vector<16x128xbf16>
    %c1 = arith.constant 1 : index
    %c0_14 = arith.constant 0 : index
    %c0_15 = arith.constant 0 : index
    %21 = vector.load %arg3[%c1, %c0_14, %c0_15] : memref<3x128x128xbf16, #tpu.memory_space<vmem>>, vector<1x128x128xbf16>
    %22 = vector.shape_cast %21 : vector<1x128x128xbf16> to vector<128x128xbf16>
    %cst_16 = arith.constant dense<0.000000e+00> : vector<16x128xf32>
    %23 = tpu.matmul %20, %22, %cst_16 {dimension_numbers = #tpu.dot_dimension_numbers<[1], [0], [0], [1], [0, 0, 1, 1], [], []>} : vector<16x128xbf16>, vector<128x128xbf16>, vector<16x128xf32> -> vector<16x128xf32>
    %24 = vector.extract_strided_slice %5 {offsets = [0, 128], sizes = [16, 128], strides = [1, 1]} : vector<16x384xf32> to vector<16x128xf32>
    %25 = arith.addf %23, %24 : vector<16x128xf32>
    %cst_17 = arith.constant 5.000000e-01 : f32
    %26 = vector.broadcast %cst_17 : f32 to vector<16x128xf32>
    %27 = arith.mulf %26, %25 : vector<16x128xf32>
    %28 = math.tanh %27 : vector<16x128xf32>
    %cst_18 = arith.constant 5.000000e-01 : f32
    %29 = vector.broadcast %cst_18 : f32 to vector<16x128xf32>
    %30 = arith.mulf %29, %28 : vector<16x128xf32>
    %cst_19 = arith.constant 5.000000e-01 : f32
    %31 = vector.broadcast %cst_19 : f32 to vector<16x128xf32>
    %32 = arith.addf %30, %31 : vector<16x128xf32>
    %33 = arith.mulf %25, %32 : vector<16x128xf32>
    %34 = arith.truncf %33 : vector<16x128xf32> to vector<16x128xbf16>
    %c2 = arith.constant 2 : index
    %c0_20 = arith.constant 0 : index
    %c0_21 = arith.constant 0 : index
    %35 = vector.load %arg3[%c2, %c0_20, %c0_21] : memref<3x128x128xbf16, #tpu.memory_space<vmem>>, vector<1x128x128xbf16>
    %36 = vector.shape_cast %35 : vector<1x128x128xbf16> to vector<128x128xbf16>
    %cst_22 = arith.constant dense<0.000000e+00> : vector<16x128xf32>
    %37 = tpu.matmul %34, %36, %cst_22 {dimension_numbers = #tpu.dot_dimension_numbers<[1], [0], [0], [1], [0, 0, 1, 1], [], []>} : vector<16x128xbf16>, vector<128x128xbf16>, vector<16x128xf32> -> vector<16x128xf32>
    %38 = vector.extract_strided_slice %5 {offsets = [0, 256], sizes = [16, 128], strides = [1, 1]} : vector<16x384xf32> to vector<16x128xf32>
    %39 = arith.addf %37, %38 : vector<16x128xf32>
    %cst_23 = arith.constant 5.000000e-01 : f32
    %40 = vector.broadcast %cst_23 : f32 to vector<16x128xf32>
    %41 = arith.mulf %40, %39 : vector<16x128xf32>
    %42 = math.tanh %41 : vector<16x128xf32>
    %cst_24 = arith.constant 5.000000e-01 : f32
    %43 = vector.broadcast %cst_24 : f32 to vector<16x128xf32>
    %44 = arith.mulf %43, %42 : vector<16x128xf32>
    %cst_25 = arith.constant 5.000000e-01 : f32
    %45 = vector.broadcast %cst_25 : f32 to vector<16x128xf32>
    %46 = arith.addf %44, %45 : vector<16x128xf32>
    %47 = arith.mulf %39, %46 : vector<16x128xf32>
    %c0_26 = arith.constant 0 : index
    %c0_27 = arith.constant 0 : index
    %48 = vector.load %arg6[%c0_26, %c0_27] : memref<16x128xf32, #tpu.memory_space<vmem>>, vector<16x128xf32>
    tpu.vector_store %arg6[%c0_26, %c0_27], %47 {strides = array<i32>} : memref<16x128xf32, #tpu.memory_space<vmem>>, vector<16x128xf32>,
    return
  }
  func.func @transform_0(%arg0: i32) -> (i32, i32) {
    %c0_i32 = arith.constant 0 : i32
    %c0_i32_0 = arith.constant 0 : i32
    return %arg0, %c0_i32 : i32, i32
  }
  func.func @transform_1(%arg0: i32) -> (i32, i32) {
    %c0_i32 = arith.constant 0 : i32
    %c0_i32_0 = arith.constant 0 : i32
    return %arg0, %c0_i32 : i32, i32
  }
  func.func @transform_2(%arg0: i32) -> (i32, i32, i32) {
    %c0_i32 = arith.constant 0 : i32
    %c0_i32_0 = arith.constant 0 : i32
    %c0_i32_1 = arith.constant 0 : i32
    %c0_i32_2 = arith.constant 0 : i32
    return %c0_i32, %c0_i32_0, %c0_i32_1 : i32, i32, i32
  }
  func.func @transform_3(%arg0: i32) -> (i32, i32) {
    %c0_i32 = arith.constant 0 : i32
    %c0_i32_0 = arith.constant 0 : i32
    %c0_i32_1 = arith.constant 0 : i32
    return %c0_i32, %c0_i32_0 : i32, i32
  }
  func.func @transform_4(%arg0: i32) -> (i32, i32) {
    %c0_i32 = arith.constant 0 : i32
    %c0_i32_0 = arith.constant 0 : i32
    %c0_i32_1 = arith.constant 0 : i32
    return %c0_i32, %c0_i32_0 : i32, i32
  }
  func.func @transform_5(%arg0: i32) -> (i32, i32) {
    %c0_i32 = arith.constant 0 : i32
    %c0_i32_0 = arith.constant 0 : i32
    return %arg0, %c0_i32 : i32, i32
  }
}

</mosaic_0001>

<bundles_post_ra>
// kernel: tpu_custom_call.1
= control target key start
LH: loop header
LB: loop body
LE: loop exit
PB: predicated region body
PF: predicated region fallthrough
CT: control target
= control target key end

     0   :  { %10 = vsyncpa [#allocation3], 0  ;;  %s1278_s0 = inlined_call_operand.hbm [shape: bf16[16,128], index: 0, kind: input, shape index: {}]   ;;  %s1279_s1 = inlined_call_operand.hbm [shape: bf16[16,128], index: 1, kind: input, shape index: {}]   ;;  %s1280_s2 = inlined_call_operand.hbm [shape: bf16[3,128,128], index: 2, kind: input, shape index: {}]   ;;  %s1281_s3 = inlined_call_operand.hbm [shape: bf16[128,384], index: 3, kind: input, shape index: {}]   ;;  %s1282_s4 = inlined_call_operand.vmem [shape: f32[1,384], index: 4, kind: input, shape index: {}]   ;;  %s1283_s5 = inlined_call_operand.hbm [shape: f32[16,128], index: 5, kind: output, shape index: {}]  }
   0x1   :  { %11 = vsyncpa [#allocation6], 0 }
   0x2   :  { %12 = vsyncpa [#allocation9], 0 }
   0x3   :  { %13 = vsyncpa [#allocation4], 0  ;;  %s1098_s18 = smov [#allocation5]   ;;  %s1099_s20 = smov [#allocation2]  }
   0x4   :  { %s31_s19 = sshll.u32 %s1098_s18, 4  ;;  %s19_s21 = sshll.u32 %s1099_s20, 4  ;;  %s32_s19 = int_to_ptr.vmem [resolvable:$true] %s31_s19  ;;  %s1142_s21 = int_to_ptr.vmem [resolvable:$true] %s19_s21 }
   0x5   :  { %s980_s24 = scalar_lea.hbm %s1279_s1, 128 }
   0x6   :  { %p981_p0 = scmp.ne.s32.totalorder %s1279_s1, %s980_s24  ;;  %p984_p1 = scmp.lt.u32.totalorder %s980_s24, %s1279_s1 }
   0x8   :  { %p986_p2 = pnand %p984_p1, %p981_p0 }
   0xa   :  { %989 = shalt.err (!%p986_p2)
}
   0xb   :  { %s990_s29 = scalar_lea.vmem %s32_s19, 128  ;;  %p995_p4 = scmp.lt.s32.totalorder %s32_s19, %s32_s19 }
   0xc   :  { %p991_p3 = scmp.ne.s32.totalorder %s32_s19, %s990_s29  ;;  %p996_p5 = scmp.lt.s32.totalorder %s990_s29, %s990_s29 }
   0xe   :  { %p997_p6 = por %p996_p5, %p995_p4 }
  0x10   :  { %p998_p7 = pnand %p997_p6, %p991_p3 }
  0x12   :  { %1001 = shalt.err (!%p998_p7)
}
  0x13   :  { %s1100_s30 = smov 64   ;;  %s1101_s6 = smov 4  }
  0x14   :  { %37 = dma.hbm_to_vmem [thread:$0]  %s1279_s1, 128, %s32_s19, [#allocation6], %s1100_s30, %s1100_s30, %s1101_s6  }
  0x15   :  { %s1002_s11 = scalar_lea.hbm %s1278_s0, 128 }
  0x16   :  { %p1003_p8 = scmp.ne.s32.totalorder %s1278_s0, %s1002_s11  ;;  %p1006_p9 = scmp.lt.u32.totalorder %s1002_s11, %s1278_s0 }
  0x18   :  { %p1008_p10 = pnand %p1006_p9, %p1003_p8 }
  0x1a   :  { %1011 = shalt.err (!%p1008_p10)
}
  0x1b   :  { %s1012_s16 = scalar_lea.vmem %s1142_s21, 128  ;;  %p1017_p12 = scmp.lt.s32.totalorder %s1142_s21, %s1142_s21 }
  0x1c   :  { %p1013_p11 = scmp.ne.s32.totalorder %s1142_s21, %s1012_s16  ;;  %p1018_p13 = scmp.lt.s32.totalorder %s1012_s16, %s1012_s16 }
  0x1e   :  { %p1019_p0 = por %p1018_p13, %p1017_p12 }
  0x20   :  { %p1020_p1 = pnand %p1019_p0, %p1013_p11 }
  0x22   :  { %1023 = shalt.err (!%p1020_p1)
}
  0x23   :  { %25 = dma.hbm_to_vmem [thread:$0]  %s1278_s0, 128, %s1142_s21, [#allocation3], %s1100_s30, %s1100_s30, %s1101_s6  }
  0x24   :  { %s1102_s18 = smov [#allocation7]   ;;  %s1103_s20 = smov [#allocation8]  }
  0x25   :  { %s43_s19 = sshll.u32 %s1102_s18, 4  ;;  %s55_s22 = sshll.u32 %s1103_s20, 4  ;;  %s44_s19 = int_to_ptr.vmem [resolvable:$true] %s43_s19  ;;  %s1179_s22 = int_to_ptr.vmem [resolvable:$true] %s55_s22 }
  0x26   :  { %s1024_s25 = scalar_lea.hbm %s1280_s2, 3072 }
  0x27   :  { %p1025_p2 = scmp.ne.s32.totalorder %s1280_s2, %s1024_s25  ;;  %p1028_p3 = scmp.lt.u32.totalorder %s1024_s25, %s1280_s2 }
  0x29   :  { %p1030_p4 = pnand %p1028_p3, %p1025_p2 }
  0x2b   :  { %1033 = shalt.err (!%p1030_p4)
}
  0x2c   :  { %s1034_s0 = scalar_lea.vmem %s44_s19, 3072  ;;  %p1039_p6 = scmp.lt.s32.totalorder %s44_s19, %s44_s19 }
  0x2d   :  { %p1035_p5 = scmp.ne.s32.totalorder %s44_s19, %s1034_s0  ;;  %p1040_p7 = scmp.lt.s32.totalorder %s1034_s0, %s1034_s0 }
  0x2f   :  { %p1041_p8 = por %p1040_p7, %p1039_p6 }
  0x31   :  { %p1042_p9 = pnand %p1041_p8, %p1035_p5 }
  0x33   :  { %1045 = shalt.err (!%p1042_p9)
}
  0x34   :  { %49 = dma.hbm_to_vmem [thread:$0]  %s1280_s2, 3072, %s44_s19, [#allocation6], %s1100_s30, %s1100_s30, %s1101_s6  }
  0x35   :  { %s1046_s10 = scalar_lea.hbm %s1281_s3, 3072 }
  0x36   :  { %p1047_p10 = scmp.ne.s32.totalorder %s1281_s3, %s1046_s10  ;;  %p1050_p11 = scmp.lt.u32.totalorder %s1046_s10, %s1281_s3 }
  0x38   :  { %p1052_p12 = pnand %p1050_p11, %p1047_p10 }
  0x3a   :  { %1055 = shalt.err (!%p1052_p12)
}
  0x3b   :  { %s1056_s15 = scalar_lea.vmem %s1179_s22, 3072  ;;  %p1061_p0 = scmp.lt.s32.totalorder %s1179_s22, %s1179_s22 }
  0x3c   :  { %p1057_p13 = scmp.ne.s32.totalorder %s1179_s22, %s1056_s15  ;;  %p1062_p1 = scmp.lt.s32.totalorder %s1056_s15, %s1056_s15 }
  0x3e   :  { %p1063_p2 = por %p1062_p1, %p1061_p0 }
  0x40   :  { %p1064_p3 = pnand %p1063_p2, %p1057_p13 }
  0x42   :  { %1067 = shalt.err (!%p1064_p3)
}
  0x43   :  { %s1104_s2 = smov 192   ;;  %s1105_s30 = smov 12  }
  0x44   :  { %61 = dma.hbm_to_vmem [thread:$0]  %s1281_s3, 3072, %s1179_s22, [#allocation9], %s1104_s2, %s1104_s2, %s1105_s30  }
  0x45   :  { %1090 = dma.done.wait [#allocation3], 128  }
  0x46   :  { %1091 = vsyncadd [#allocation3], 4294967168 }
  0x47   :  { %1092 = dma.done.wait [#allocation6], 3200  }
  0x48   :  { %1093 = vsyncadd [#allocation6], 4294964096 }
  0x49   :  { %1094 = dma.done.wait [#allocation9], 3072  }
  0x4a   :  { %1095 = vsyncadd [#allocation9], 4294964224  ;;  %v1106_v0 = vmov 0   ;;  %v1107_v1 = vmov 0.0   ;;  %vm1108_vm0 = vmmov 0   ;;  %v934_v20 = vld [vmem:[#allocation5] sm:$0xff]   ;;  %v113_v48 = vlaneseq }
  0x4b   :  { %294 = vmatprep.mubr.bf16.mxu0 %v1106_v0  ;;  %810 = vmatprep.subr.bf16.mxu1 %v1107_v1  ;;  %v910_v2 = vld [vmem:[#allocation8 + $0x4] ss:$12 sps:$4 sm:$0xff]   ;;  %v912_v3 = vld [vmem:[#allocation8] ss:$12 sps:$4 sm:$0xff]   ;;  %v913_v4 = vld [vmem:[#allocation8 + $0x1c] ss:$12 sps:$4 sm:$0xff]  }
  0x4c   :  { %826 = vmatprep.mubr.msk.bf16.mxu1 %vm1108_vm0, %v1107_v1  ;;  %262 = vmatprep.subr.bf16.mxu0 %v910_v2  ;;  %v915_v5 = vld [vmem:[#allocation8 + $0x18] ss:$12 sps:$4 sm:$0xff]   ;;  %v916_v6 = vld [vmem:[#allocation8 + $0x34] ss:$12 sps:$4 sm:$0xff]   ;;  %v918_v7 = vld [vmem:[#allocation8 + $0x30] ss:$12 sps:$4 sm:$0xff]  }
  0x4d   :  { %263 = vmatpush1.bf16.msra.mxu0 %v912_v3  ;;  %v919_v8 = vld [vmem:[#allocation8 + $0x4c] ss:$12 sps:$4 sm:$0xff]   ;;  %v921_v9 = vld [vmem:[#allocation8 + $0x48] ss:$12 sps:$4 sm:$0xff]   ;;  %v922_v10 = vld [vmem:[#allocation8 + $0x64] ss:$12 sps:$4 sm:$0xff]  }
  0x4e   :  { %264 = vmatprep.subr.bf16.mxu0 %v913_v4  ;;  %v924_v11 = vld [vmem:[#allocation8 + $0x60] ss:$12 sps:$4 sm:$0xff]   ;;  %v925_v12 = vld [vmem:[#allocation8 + $0x7c] ss:$12 sps:$4 sm:$0xff]   ;;  %v927_v13 = vld [vmem:[#allocation8 + $0x78] ss:$12 sps:$4 sm:$0xff]  }
  0x4f   :  { %v928_v14 = vld [vmem:[#allocation8 + $0x94] ss:$12 sps:$4 sm:$0xff]   ;;  %v930_v15 = vld [vmem:[#allocation8 + $0x90] ss:$12 sps:$4 sm:$0xff]   ;;  %v931_v17 = vld [vmem:[#allocation8 + $0xac] ss:$12 sps:$4 sm:$0xff]  }
  0x50   :  { %v944_v16 = vld [vmem:[#allocation8 + $0x8] ss:$12 sps:$4 sm:$0xff]   ;;  %v945_v18 = vld [vmem:[#allocation8 + $0x20] ss:$12 sps:$4 sm:$0xff]   ;;  %v938_v24 = vld [vmem:[#allocation7 + $0x18] sm:$0xff]   ;;  %v1244_v49 = vshrl.u32 %v113_v48, 7 }
  0x51   :  { %265 = vmatpush1.bf16.msra.mxu0 %v915_v5  ;;  %811 = vmatpush3.bf16.msra.mxu1 %v944_v16  ;;  %v933_v19 = vld [vmem:[#allocation8 + $0xa8] ss:$12 sps:$4 sm:$0xff]   ;;  %v935_v21 = vld [vmem:[#allocation7] sm:$0xff]   ;;  %v942_v28 = vld [vmem:[#allocation7 + $0x38] sm:$0xff]  }
  0x52   :  { %266 = vmatprep.subr.bf16.mxu0 %v916_v6  ;;  %812 = vmatprep.subr.bf16.mxu1 %v1107_v1  ;;  %v936_v22 = vld [vmem:[#allocation7 + $0x8] sm:$0xff]   ;;  %v937_v23 = vld [vmem:[#allocation7 + $0x10] sm:$0xff]   ;;  %v939_v25 = vld [vmem:[#allocation7 + $0x20] sm:$0xff]   ;;  %v115_v50 = vsub.s32 0, %v1244_v49 }
  0x53   :  { %v940_v26 = vld [vmem:[#allocation7 + $0x28] sm:$0xff]   ;;  %v941_v27 = vld [vmem:[#allocation7 + $0x30] sm:$0xff]   ;;  %v946_v30 = vld [vmem:[#allocation8 + $0x38] ss:$12 sps:$4 sm:$0xff]  }
  0x54   :  { %v943_v29 = vld [vmem:[#allocation2] sm:$0xff]   ;;  %v949_v33 = vld [vmem:[#allocation8 + $0x80] ss:$12 sps:$4 sm:$0xff]   ;;  %v950_v34 = vld [vmem:[#allocation8 + $0x98] ss:$12 sps:$4 sm:$0xff]  }
  0x55   :  { %267 = vmatpush1.bf16.msra.mxu0 %v918_v7  ;;  %813 = vmatpush3.bf16.msra.mxu1 %v945_v18  ;;  %v947_v31 = vld [vmem:[#allocation8 + $0x50] ss:$12 sps:$4 sm:$0xff]   ;;  %v948_v32 = vld [vmem:[#allocation8 + $0x68] ss:$12 sps:$4 sm:$0xff]   ;;  %v952_v36 = vld [vmem:[#allocation7 + $0x40] sm:$0xff]  }
  0x56   :  { %268 = vmatprep.subr.bf16.mxu0 %v919_v8  ;;  %814 = vmatprep.subr.bf16.mxu1 %v1107_v1  ;;  %v951_v35 = vld [vmem:[#allocation8 + $0xb0] ss:$12 sps:$4 sm:$0xff]   ;;  %v953_v37 = vld [vmem:[#allocation7 + $0x48] sm:$0xff]   ;;  %v956_v40 = vld [vmem:[#allocation7 + $0x60] sm:$0xff]  }
  0x57   :  { %v954_v38 = vld [vmem:[#allocation7 + $0x50] sm:$0xff]   ;;  %v955_v39 = vld [vmem:[#allocation7 + $0x58] sm:$0xff]   ;;  %v957_v41 = vld [vmem:[#allocation7 + $0x68] sm:$0xff]  }
  0x58   :  { %v958_v42 = vld [vmem:[#allocation7 + $0x70] sm:$0xff]   ;;  %v959_v43 = vld [vmem:[#allocation7 + $0x78] sm:$0xff]   ;;  %v960_v8 = vld [vmem:[#allocation7 + $0x80] sm:$0xff]  }
  0x59   :  { %269 = vmatpush1.bf16.msra.mxu0 %v921_v9  ;;  %815 = vmatpush3.bf16.msra.mxu1 %v946_v30  ;;  %v1250_v51 = vld [vmem:[%s1282_s4] sm:$0x7]  ;;  %v967_v16 = vld [vmem:[#allocation7 + $0xb8] sm:$0xff]   ;;  %s1109_s4 = smov [#allocation10]  }
  0x5a   :  { %270 = vmatprep.subr.bf16.mxu0 %v922_v10  ;;  %816 = vmatprep.subr.bf16.mxu1 %v1107_v1  ;;  %v116_v52 = vrot.slane %v1250_v51, %v115_v50  ;;  %v961_v10 = vld [vmem:[#allocation7 + $0x88] sm:$0xff]   ;;  %s710_s17 = sshll.u32 %s1109_s4, 4  ;;  %s711_s17 = int_to_ptr.vmem [resolvable:$true] %s710_s17 }
  0x5b   :  { %s1068_s18 = scalar_lea.vmem %s711_s17, 256  ;;  %p1073_p5 = scmp.lt.s32.totalorder %s711_s17, %s711_s17 }
  0x5c   :  { %p1069_p4 = scmp.ne.s32.totalorder %s711_s17, %s1068_s18  ;;  %p1074_p6 = scmp.lt.s32.totalorder %s1068_s18, %s1068_s18 }
  0x5d   :  { %271 = vmatpush1.bf16.msra.mxu0 %v924_v11  ;;  %817 = vmatpush3.bf16.msra.mxu1 %v947_v31  ;;  %v962_v11 = vld [vmem:[#allocation7 + $0x90] sm:$0xff]  }
  0x5e   :  { %272 = vmatprep.subr.bf16.mxu0 %v925_v12  ;;  %818 = vmatprep.subr.bf16.mxu1 %v1107_v1  ;;  %v963_v12 = vld [vmem:[#allocation7 + $0x98] sm:$0xff]   ;;  %p1075_p7 = por %p1074_p6, %p1073_p5 }
  0x60   :  { %p1076_p8 = pnand %p1075_p7, %p1069_p4 }
  0x61   :  { %273 = vmatpush1.bf16.msra.mxu0 %v927_v13  ;;  %819 = vmatpush3.bf16.msra.mxu1 %v948_v32  ;;  %v964_v13 = vld [vmem:[#allocation7 + $0xa0] sm:$0xff]  }
  0x62   :  { %274 = vmatprep.subr.bf16.mxu0 %v928_v14  ;;  %820 = vmatprep.subr.bf16.mxu1 %v1107_v1  ;;  %v965_v14 = vld [vmem:[#allocation7 + $0xa8] sm:$0xff]  }
  0x65   :  { %275 = vmatpush1.bf16.msra.mxu0 %v930_v15  ;;  %821 = vmatpush3.bf16.msra.mxu1 %v949_v33  ;;  %v966_v15 = vld [vmem:[#allocation7 + $0xb0] sm:$0xff]  }
  0x66   :  { %276 = vmatprep.subr.bf16.mxu0 %v931_v17  ;;  %822 = vmatprep.subr.bf16.mxu1 %v1107_v1  ;;  %v119_v17 = vsub.s32 1, %v1244_v49 }
  0x68   :  { %v120_v18 = vrot.slane %v1250_v51, %v119_v17 }
  0x69   :  { %277 = vmatpush1.bf16.msra.mxu0 %v933_v19  ;;  %823 = vmatpush3.bf16.msra.mxu1 %v950_v34 }
  0x6a   :  { %830 = vmatprep.subr.bf16.mxu0 %v1107_v1  ;;  %824 = vmatprep.subr.bf16.mxu1 %v1107_v1 }
  0x6c   :  { %295 = vmatmul.mubr.bf16.vlgmr.msra.gmra.mrb[0].mxu0 %v934_v20 }
  0x6d   :  { %831 = vmatpush3.bf16.msra.mxu0 %v935_v21  ;;  %846 = vmatprep.mubr.msk.bf16.mxu0 %vm1108_vm0, %v1107_v1 }
  0x6e   :  { %832 = vmatprep.subr.bf16.mxu0 %v1107_v1  ;;  %825 = vmatpush3.bf16.msra.mxu1 %v951_v35 }
  0x6f   :  { %850 = vmatprep.subr.bf16.mxu1 %v1107_v1 }
  0x71   :  { %833 = vmatpush3.bf16.msra.mxu0 %v936_v22  ;;  %827 = vmatmul.mubr.bf16.vlgmr.msra.gmra.mrb[0].mxu1 %v934_v20 }
  0x72   :  { %834 = vmatprep.subr.bf16.mxu0 %v1107_v1  ;;  %851 = vmatpush3.bf16.msra.mxu1 %v952_v36 }
  0x73   :  { %866 = vmatprep.mubr.msk.bf16.mxu1 %vm1108_vm0, %v1107_v1  ;;  %852 = vmatprep.subr.bf16.mxu1 %v1107_v1 }
  0x75   :  { %835 = vmatpush3.bf16.msra.mxu0 %v937_v23 }
  0x76   :  { %836 = vmatprep.subr.bf16.mxu0 %v1107_v1  ;;  %853 = vmatpush3.bf16.msra.mxu1 %v953_v37  ;;  %v123_v37 = vsub.s32 2, %v1244_v49 }
  0x77   :  { %854 = vmatprep.subr.bf16.mxu1 %v1107_v1 }
  0x79   :  { %837 = vmatpush3.bf16.msra.mxu0 %v938_v24 }
  0x7a   :  { %838 = vmatprep.subr.bf16.mxu0 %v1107_v1  ;;  %855 = vmatpush3.bf16.msra.mxu1 %v954_v38  ;;  %v124_v38 = vrot.slane %v1250_v51, %v123_v37 }
  0x7b   :  { %856 = vmatprep.subr.bf16.mxu1 %v1107_v1 }
  0x7d   :  { %839 = vmatpush3.bf16.msra.mxu0 %v939_v25 }
  0x7e   :  { %840 = vmatprep.subr.bf16.mxu0 %v1107_v1  ;;  %857 = vmatpush3.bf16.msra.mxu1 %v955_v39 }
  0x7f   :  { %858 = vmatprep.subr.bf16.mxu1 %v1107_v1 }
  0x81   :  { %841 = vmatpush3.bf16.msra.mxu0 %v940_v26 }
  0x82   :  { %842 = vmatprep.subr.bf16.mxu0 %v1107_v1  ;;  %859 = vmatpush3.bf16.msra.mxu1 %v956_v40 }
  0x83   :  { %860 = vmatprep.subr.bf16.mxu1 %v1107_v1 }
  0x85   :  { %843 = vmatpush3.bf16.msra.mxu0 %v941_v27 }
  0x86   :  { %844 = vmatprep.subr.bf16.mxu0 %v1107_v1  ;;  %861 = vmatpush3.bf16.msra.mxu1 %v957_v41 }
  0x87   :  { %862 = vmatprep.subr.bf16.mxu1 %v1107_v1 }
  0x89   :  { %845 = vmatpush3.bf16.msra.mxu0 %v942_v28 }
  0x8a   :  { %863 = vmatpush3.bf16.msra.mxu1 %v958_v42 }
  0x8b   :  { %864 = vmatprep.subr.bf16.mxu1 %v1107_v1 }
  0x8c   :  { %847 = vmatmul.mubr.bf16.vlgmr.msra.gmra.mrb[4].mxu0 %v943_v29 }
  0x8e   :  { %865 = vmatpush3.bf16.msra.mxu1 %v959_v43 }
  0x8f   :  { %870 = vmatprep.subr.bf16.mxu1 %v1107_v1 }
 0x13f   :  { %v296_v44 = vpop.f32.mrb[0].mxu0 }
 0x140   :  { %v298_v45 = vpop.f32.mrb[1].mxu0  ;;  %v297_v53 = vadd.f32 %v296_v44, %v116_v52 }
 0x141   :  { %v300_v46 = vpop.f32.mrb[2].mxu0  ;;  %v299_v19 = vadd.f32 %v298_v45, %v120_v18 }
 0x142   :  { %v302_v47 = vpop.f32.mrb[3].mxu0  ;;  %v301_v55 = vadd.f32 %v300_v46, %v116_v52 }
 0x143   :  { %v303_v21 = vadd.f32 %v302_v47, %v120_v18 }
 0x15f   :  { %v452_v54 = vpop.f32.mrb[4].mxu0 }
 0x160   :  { %v453_v56 = vadd.f32 %v452_v54, %v297_v53  ;;  %v848_v57 = vpop.f32.mrb[5].mxu0 }
 0x161   :  { %v455_v58 = vpop.f32.mrb[6].mxu0 }
 0x162   :  { %v459_v59 = vmul.f32 0.5, %v453_v56  ;;  %v456_v60 = vadd.f32 %v455_v58, %v301_v55  ;;  %v849_v61 = vpop.f32.mrb[7].mxu0 }
 0x164   :  { %968 = vtanh.f32 %v459_v59  ;;  %v460_v62 = vmul.f32 0.5, %v456_v60 }
 0x166   :  { %970 = vtanh.f32 %v460_v62 }
 0x16e   :  { %v969_v63 = vpop.eup %968 }
 0x16f   :  { %v463_v0 = vmul.f32 0.5, %v969_v63 }
 0x170   :  { %v971_v2 = vpop.eup %970 }
 0x171   :  { %v465_v3 = vadd.f32 0.5, %v463_v0  ;;  %v464_v4 = vmul.f32 0.5, %v971_v2 }
 0x173   :  { %v466_v5 = vadd.f32 0.5, %v464_v4  ;;  %v467_v6 = vmul.f32 %v465_v3, %v453_v56 }
 0x175   :  { %v468_v7 = vmul.f32 %v466_v5, %v456_v60 }
 0x177   :  { %v469_v9 = vpack.c.bf16 %v468_v7, %v467_v6 }
 0x179   :  { %867 = vmatmul.mubr.bf16.vlgmr.msra.gmra.mrb[4].mxu1 %v469_v9 }
 0x17a   :  { %871 = vmatpush3.bf16.msra.mxu1 %v960_v8  ;;  %886 = vmatprep.mubr.msk.bf16.mxu1 %vm1108_vm0, %v1107_v1 }
 0x17b   :  { %872 = vmatprep.subr.bf16.mxu1 %v1107_v1 }
 0x17e   :  { %873 = vmatpush3.bf16.msra.mxu1 %v961_v10 }
 0x17f   :  { %874 = vmatprep.subr.bf16.mxu1 %v1107_v1 }
 0x182   :  { %875 = vmatpush3.bf16.msra.mxu1 %v962_v11 }
 0x183   :  { %876 = vmatprep.subr.bf16.mxu1 %v1107_v1 }
 0x186   :  { %877 = vmatpush3.bf16.msra.mxu1 %v963_v12 }
 0x187   :  { %878 = vmatprep.subr.bf16.mxu1 %v1107_v1 }
 0x18a   :  { %879 = vmatpush3.bf16.msra.mxu1 %v964_v13 }
 0x18b   :  { %880 = vmatprep.subr.bf16.mxu1 %v1107_v1 }
 0x18e   :  { %881 = vmatpush3.bf16.msra.mxu1 %v965_v14 }
 0x18f   :  { %882 = vmatprep.subr.bf16.mxu1 %v1107_v1 }
 0x192   :  { %883 = vmatpush3.bf16.msra.mxu1 %v966_v15 }
 0x193   :  { %884 = vmatprep.subr.bf16.mxu1 %v1107_v1 }
 0x196   :  { %885 = vmatpush3.bf16.msra.mxu1 %v967_v16 }
 0x24c   :  { %v569_v20 = vpop.f32.mrb[4].mxu1 }
 0x24d   :  { %v570_v22 = vadd.f32 %v569_v20, %v299_v19  ;;  %v868_v23 = vpop.f32.mrb[5].mxu1 }
 0x24e   :  { %v572_v24 = vpop.f32.mrb[6].mxu1 }
 0x24f   :  { %v576_v25 = vmul.f32 0.5, %v570_v22  ;;  %v573_v26 = vadd.f32 %v572_v24, %v303_v21  ;;  %v869_v27 = vpop.f32.mrb[7].mxu1 }
 0x251   :  { %972 = vtanh.f32 %v576_v25  ;;  %v577_v28 = vmul.f32 0.5, %v573_v26 }
 0x253   :  { %974 = vtanh.f32 %v577_v28 }
 0x25b   :  { %v973_v29 = vpop.eup %972 }
 0x25c   :  { %v580_v1 = vmul.f32 0.5, %v973_v29 }
 0x25d   :  { %v975_v30 = vpop.eup %974 }
 0x25e   :  { %v582_v31 = vadd.f32 0.5, %v580_v1  ;;  %v581_v32 = vmul.f32 0.5, %v975_v30 }
 0x260   :  { %v583_v33 = vadd.f32 0.5, %v581_v32  ;;  %v584_v34 = vmul.f32 %v582_v31, %v570_v22 }
 0x262   :  { %v585_v35 = vmul.f32 %v583_v33, %v573_v26 }
 0x264   :  { %v586_v36 = vpack.c.bf16 %v585_v35, %v584_v34 }
 0x266   :  { %887 = vmatmul.mubr.bf16.vlgmr.msra.gmra.mrb[0].mxu1 %v586_v36 }
 0x339   :  { %v686_v39 = vpop.f32.mrb[0].mxu1 }
 0x33a   :  { %v890_v40 = vadd.f32 %v686_v39, %v124_v38  ;;  %v888_v41 = vpop.f32.mrb[1].mxu1 }
 0x33b   :  { %v689_v42 = vpop.f32.mrb[2].mxu1 }
 0x33c   :  { %v693_v43 = vmul.f32 0.5, %v890_v40  ;;  %v891_v44 = vadd.f32 %v689_v42, %v124_v38  ;;  %v889_v45 = vpop.f32.mrb[3].mxu1 }
 0x33e   :  { %976 = vtanh.f32 %v693_v43  ;;  %v694_v46 = vmul.f32 0.5, %v891_v44 }
 0x340   :  { %978 = vtanh.f32 %v694_v46 }
 0x348   :  { %v977_v47 = vpop.eup %976 }
 0x349   :  { %v697_v48 = vmul.f32 0.5, %v977_v47 }
 0x34a   :  { %v979_v50 = vpop.eup %978 }
 0x34b   :  { %v699_v52 = vadd.f32 0.5, %v697_v48  ;;  %v698_v53 = vmul.f32 0.5, %v979_v50 }
 0x34d   :  { %v701_v49 = vmul.f32 %v890_v40, %v699_v52  ;;  %v700_v54 = vadd.f32 0.5, %v698_v53 }
 0x34f   :  { %703 = vst [vmem:[#allocation10] sm:$0xff] %v701_v49  ;;  %v702_v51 = vmul.f32 %v891_v44, %v700_v54 }
 0x351   :  { %704 = vst [vmem:[#allocation10 + $0x8] sm:$0xff] %v702_v51 }
 0x352   :  { %1079 = shalt.err (!%p1076_p8)
}
 0x353   :  { %s1080_s22 = scalar_lea.hbm %s1283_s5, 256 }
 0x354   :  { %p1081_p9 = scmp.ne.s32.totalorder %s1283_s5, %s1080_s22  ;;  %p1084_p10 = scmp.lt.u32.totalorder %s1080_s22, %s1283_s5 }
 0x356   :  { %p1086_p11 = pnand %p1084_p10, %p1081_p9 }
 0x358   :  { %1089 = shalt.err (!%p1086_p11)
}
 0x359   :  { %s1110_s27 = smov 128   ;;  %s1111_s28 = smov 8  }
 0x35a   :  { %716 = dma.vmem_to_hbm [thread:$0]  %s711_s17, 256, %s1283_s5, [#allocation4], %s1110_s27, %s1110_s27, %s1111_s28  }
 0x35b   :  { %1096 = dma.done.wait [#allocation4], 256  }
 0x35c   :  { %1097 = vsyncadd [#allocation4], 4294967040 }
 0x35d   :  { %720 = vsyncpa [#allocation3], 1 }
 0x35e   :  { %721 = vsyncpa [#allocation6], 1 }
 0x35f   :  { %722 = vsyncpa [#allocation9], 1 }
 0x360   :  { %723 = vsyncpa [#allocation4], 1 }

</bundles_post_ra>
